<compile_context>
chip_gen: v6e
topology: v6e:2x2x1
jax: 0.10.0
libtpu: 0.0.40
codegen_flags: <defaults>
</compile_context>

<pallas_src>
import functools

import jax
import jax.numpy as jnp
from jax.experimental import pallas as pl
from jax.experimental.pallas import tpu as pltpu


# Scoped-VMEM budget. With K-tiling the per-step working set is bounded by the
# tile sizes (independent of N), so this is comfortable headroom on every
# generation (v5e/v6e: 128 MiB physical, v7x: 64 MiB physical).
_VMEM_LIMIT_BYTES = 64 * 1024 * 1024

_NEG_INF = -1e30  # finite "minus infinity" for masking padded class lanes


def _layer1_agg_kernel(a_ref, xw1_ref, dis_ref, b1_ref, w2_ref, xw2_ref, acc_ref):
    """K-tiled:  acc += A_tile @ xw1_tile ;  on the last K step:
         h1  = relu(acc * dis_i + b1)              (layer-1 GCNConv + ReLU)
         xw2 = (h1 @ w2_pad) * dis_i  -> bf16      (layer-2 transform, fused)
    """
    k = pl.program_id(1)

    @pl.when(k == 0)
    def _():
        acc_ref[...] = jnp.zeros_like(acc_ref)

    acc_ref[...] += jnp.dot(a_ref[...], xw1_ref[...],
                            preferred_element_type=jnp.float32)

    @pl.when(k == pl.num_programs(1) - 1)
    def _():
        dis = dis_ref[...]                                    # [tile_n, 1] f32
        h1 = jnp.maximum(acc_ref[...] * dis + b1_ref[...], 0.0)
        # dropout: identity in eval mode.
        # TODO(synk): training-mode dropout (pltpu.prng_random_bits mask) not implemented.
        xw2 = jnp.dot(h1, w2_ref[...], preferred_element_type=jnp.float32) * dis
        xw2_ref[...] = xw2.astype(xw2_ref.dtype)


def _layer2_agg_kernel(a_ref, xw2_ref, dis_ref, b2_ref, out_ref, acc_ref, *,
                       num_classes):
    """K-tiled:  acc += A_tile @ xw2_tile ;  on the last K step:
         z   = acc * dis_i + b2   (padded class lanes masked)
         out = log_softmax(z)     (lane-dense f32 store)
    """
    k = pl.program_id(1)

    @pl.when(k == 0)
    def _():
        acc_ref[...] = jnp.zeros_like(acc_ref)

    acc_ref[...] += jnp.dot(a_ref[...], xw2_ref[...],
                            preferred_element_type=jnp.float32)

    @pl.when(k == pl.num_programs(1) - 1)
    def _():
        z = acc_ref[...] * dis_ref[...] + b2_ref[...]
        lane = jax.lax.broadcasted_iota(jnp.int32, z.shape, dimension=1)
        z = jnp.where(lane < num_classes, z, _NEG_INF)        # mask padded lanes
        z_max = jnp.max(z, axis=1, keepdims=True)
        z_shift = z - z_max
        lse = jnp.log(jnp.sum(jnp.exp(z_shift), axis=1, keepdims=True))
        out_ref[...] = (z_shift - lse).astype(out_ref.dtype)


def gcn_forward(x, edge_index, w1, b1, w2, b2, *, tile_n=256, tile_k=256):
    """x: [N, F] float32, edge_index: [2, E] int32 (src, dst)."""
    n, f_in = x.shape
    h = w1.shape[1]
    c = w2.shape[1]

    lane = 128
    c_pad = lane * ((c + lane - 1) // lane)
    blk = max(tile_n, tile_k)                     # power-of-two tiles assumed
    n_pad = blk * ((n + blk - 1) // blk)
    assert n_pad % tile_n == 0 and n_pad % tile_k == 0

    # --- Graph setup (once per graph; not the kernel hot path) ---------------
    # A is built directly in bf16 (0/1 entries are exact in bf16); degrees are
    # reduced with f32 accumulation.
    # TODO(synk): for genuinely sparse graphs (E << N^2) replace the dense
    # adjacency stream with a scalar-prefetch / gather-based SpMM kernel.
    src, dst = edge_index[0], edge_index[1]
    a = jnp.zeros((n_pad, n_pad), dtype=jnp.bfloat16)
    a = a.at[dst, src].set(1.0)                   # message src -> dst
    a = a.at[src, dst].set(1.0)                   # symmetrize (undirected)
    idx = jnp.arange(n)
    a = a.at[idx, idx].set(1.0)                   # self-loops (real nodes only)

    deg = jnp.sum(a, axis=1, keepdims=True, dtype=jnp.float32)
    dis = jax.lax.rsqrt(jnp.maximum(deg, 1.0))    # [n_pad, 1]  D^-1/2

    x_pad = jnp.zeros((n_pad, f_in), jnp.float32).at[:n].set(x.astype(jnp.float32))

    # Layer-1 transform: skinny K=F matmul done in plain XLA, with the
    # source-side D^-1/2 folded in, then cast to bf16 for the MXU path.
    xw1 = ((x_pad @ w1) * dis).astype(jnp.bfloat16)           # [n_pad, h]

    # Lane-pad the class dimension so the epilogue matmul and the final stores
    # are lane-dense (padded lanes are masked before log_softmax in-kernel).
    w2_pad = jnp.zeros((h, c_pad), jnp.float32).at[:, :c].set(w2)
    b2_pad = jnp.zeros((1, c_pad), jnp.float32).at[:, :c].set(b2.reshape(1, c))
    b1 = b1.reshape(1, h).astype(jnp.float32)

    grid = (n_pad // tile_n, n_pad // tile_k)
    cparams = pltpu.CompilerParams(
        dimension_semantics=("parallel", "arbitrary"),
        vmem_limit_bytes=_VMEM_LIMIT_BYTES,
    )
    # TODO(synk): mark the constant-index resident operands (xw, bias, w2) with
    # pipeline_mode=pl.Buffered(1) once single-buffering is needed for VMEM
    # headroom at large N on v7x.

    # --- Fused layer 1: GCN aggregation + ReLU + layer-2 transform -----------
    cost1 = pl.CostEstimate(
        flops=2 * n_pad * n_pad * h + 2 * n_pad * h * c_pad,
        transcendentals=0,
        bytes_accessed=(n_pad * n_pad * 2 + n_pad * h * 2       # A + xw1 (bf16)
                        + n_pad * c_pad * 2                      # xw2 out (bf16)
                        + n_pad * 4 + h * 4 + h * c_pad * 4),    # dis + b1 + w2
    )
    xw2 = pl.pallas_call(
        _layer1_agg_kernel,
        out_shape=jax.ShapeDtypeStruct((n_pad, c_pad), jnp.bfloat16),
        grid_spec=pltpu.PrefetchScalarGridSpec(
            num_scalar_prefetch=0,
            grid=grid,
            in_specs=[
                pl.BlockSpec((tile_n, tile_k), lambda i, k: (i, k)),  # A tile
                pl.BlockSpec((tile_k, h), lambda i, k: (k, 0)),       # scaled XW1
                pl.BlockSpec((tile_n, 1), lambda i, k: (i, 0)),       # D^-1/2
                pl.BlockSpec((1, h), lambda i, k: (0, 0)),            # bias 1
                pl.BlockSpec((h, c_pad), lambda i, k: (0, 0)),        # w2 (padded)
            ],
            out_specs=pl.BlockSpec((tile_n, c_pad), lambda i, k: (i, 0)),
            scratch_shapes=[pltpu.VMEM((tile_n, h), jnp.float32)],
        ),
        compiler_params=cparams,
        cost_estimate=cost1,
    )(a, xw1, dis, b1, w2_pad)

    # --- Layer 2: GCN aggregation + bias + masked log_softmax ----------------
    cost2 = pl.CostEstimate(
        flops=2 * n_pad * n_pad * c_pad,
        transcendentals=n_pad * c_pad,
        bytes_accessed=(n_pad * n_pad * 2 + n_pad * c_pad * 2
                        + n_pad * c_pad * 4 + n_pad * 4 + c_pad * 4),
    )
    out = pl.pallas_call(
        functools.partial(_layer2_agg_kernel, num_classes=c),
        out_shape=jax.ShapeDtypeStruct((n_pad, c_pad), jnp.float32),
        grid_spec=pltpu.PrefetchScalarGridSpec(
            num_scalar_prefetch=0,
            grid=grid,
            in_specs=[
                pl.BlockSpec((tile_n, tile_k), lambda i, k: (i, k)),  # A tile
                pl.BlockSpec((tile_k, c_pad), lambda i, k: (k, 0)),   # scaled XW2
                pl.BlockSpec((tile_n, 1), lambda i, k: (i, 0)),       # D^-1/2
                pl.BlockSpec((1, c_pad), lambda i, k: (0, 0)),        # bias 2 (padded)
            ],
            out_specs=pl.BlockSpec((tile_n, c_pad), lambda i, k: (i, 0)),
            scratch_shapes=[pltpu.VMEM((tile_n, c_pad), jnp.float32)],
        ),
        compiler_params=cparams,
        cost_estimate=cost2,
    )(a, xw2, dis, b2_pad)

    return out[:n, :c]


if __name__ == "__main__":
    N, F_IN, H, C = 256, 16, 128, 8
    E = 512
    TILE_N = 256
    TILE_K = 256

    key = jax.random.PRNGKey(0)
    k_x, k_e, k_w1, k_w2 = jax.random.split(key, 4)

    x = jax.random.normal(k_x, (N, F_IN), dtype=jnp.float32)
    edge_index = jax.random.randint(k_e, (2, E), 0, N, dtype=jnp.int32)

    # Deterministic Glorot-style init (GCNConv default: glorot weights, zero bias).
    lim1 = jnp.sqrt(6.0 / (F_IN + H))
    w1 = jax.random.uniform(k_w1, (F_IN, H), jnp.float32, -lim1, lim1)
    b1 = jnp.zeros((1, H), jnp.float32)
    lim2 = jnp.sqrt(6.0 / (H + C))
    w2 = jax.random.uniform(k_w2, (H, C), jnp.float32, -lim2, lim2)
    b2 = jnp.zeros((1, C), jnp.float32)

    out = gcn_forward(x, edge_index, w1, b1, w2, b2, tile_n=TILE_N, tile_k=TILE_K)
    out = jax.block_until_ready(out)

    assert out.shape == (N, C)

    # Sanity 1: rows of log_softmax must exponentiate-sum to 1.
    row_sums = jnp.exp(out).sum(axis=1)
    assert jnp.allclose(row_sums, jnp.ones((N,), jnp.float32), atol=1e-4)

    # Sanity 2: match a pure-JAX f32 reference (loose tol: kernel carries A and
    # intermediate activations in bf16).
    a_ref = jnp.zeros((N, N), jnp.float32)
    a_ref = a_ref.at[edge_index[1], edge_index[0]].set(1.0)
    a_ref = a_ref.at[edge_index[0], edge_index[1]].set(1.0)
    a_ref = a_ref.at[jnp.arange(N), jnp.arange(N)].set(1.0)
    d_ref = jnp.sum(a_ref, axis=1, keepdims=True)
    dis_ref = 1.0 / jnp.sqrt(jnp.maximum(d_ref, 1.0))
    a_norm = dis_ref * a_ref * dis_ref.T
    h_ref = jnp.maximum(a_norm @ (x @ w1) + b1, 0.0)
    z_ref = a_norm @ (h_ref @ w2) + b2
    ref = jax.nn.log_softmax(z_ref, axis=1)
    max_err = float(jnp.max(jnp.abs(out - ref)))
    assert max_err < 0.1, max_err

    print("KERNEL_OK")
</pallas_src>

<mosaic_0001>
module attributes {stable_mosaic.version = 11 : i64} {
  func.func @_layer1_agg_kernel(%arg0: i32, %arg1: i32, %arg2: memref<256x256xbf16, #tpu.memory_space<vmem>>, %arg3: memref<256x128xbf16, #tpu.memory_space<vmem>>, %arg4: memref<256x1xf32, #tpu.memory_space<vmem>>, %arg5: memref<1x128xf32, #tpu.memory_space<vmem>>, %arg6: memref<128x128xf32, #tpu.memory_space<vmem>>, %arg7: memref<256x128xbf16, #tpu.memory_space<vmem>>, %arg8: memref<256x128xf32, #tpu.memory_space<vmem>>) attributes {dimension_semantics = [#tpu.dimension_semantics<parallel>, #tpu.dimension_semantics<arbitrary>], iteration_bounds = array<i64: 1, 1>, scalar_prefetch = 0 : i64, scratch_operands = 1 : i64, tpu.core_type = #tpu.core_type<tc>, window_params = [{transform_indices = @transform_0, window_bounds = array<i64: 256, 256>}, {transform_indices = @transform_1, window_bounds = array<i64: 256, 128>}, {transform_indices = @transform_2, window_bounds = array<i64: 256, 1>}, {pipeline_mode = #tpu.pipeline_mode<synchronous>, transform_indices = @transform_3, window_bounds = array<i64: 1, 128>}, {pipeline_mode = #tpu.pipeline_mode<synchronous>, transform_indices = @transform_4, window_bounds = array<i64: 128, 128>}, {transform_indices = @transform_5, window_bounds = array<i64: 256, 128>}]} {
    %c0_i32 = arith.constant 0 : i32
    %0 = arith.cmpi eq, %arg1, %c0_i32 : i32
    %1 = arith.extui %0 : i1 to i32
    %c0_i32_0 = arith.constant 0 : i32
    %2 = arith.cmpi ne, %1, %c0_i32_0 : i32
    scf.if %2 {
      %cst_10 = arith.constant 0.000000e+00 : f32
      %12 = vector.broadcast %cst_10 : f32 to vector<256x128xf32>
      %c0_11 = arith.constant 0 : index
      %c0_12 = arith.constant 0 : index
      %13 = vector.load %arg8[%c0_11, %c0_12] : memref<256x128xf32, #tpu.memory_space<vmem>>, vector<256x128xf32>
      tpu.vector_store %arg8[%c0_11, %c0_12], %12 {strides = array<i32>} : memref<256x128xf32, #tpu.memory_space<vmem>>, vector<256x128xf32>,
    } else {
    }
    %c0 = arith.constant 0 : index
    %c0_1 = arith.constant 0 : index
    %3 = vector.load %arg8[%c0, %c0_1] : memref<256x128xf32, #tpu.memory_space<vmem>>, vector<256x128xf32>
    %c0_2 = arith.constant 0 : index
    %c0_3 = arith.constant 0 : index
    %4 = vector.load %arg2[%c0_2, %c0_3] : memref<256x256xbf16, #tpu.memory_space<vmem>>, vector<256x256xbf16>
    %c0_4 = arith.constant 0 : index
    %c0_5 = arith.constant 0 : index
    %5 = vector.load %arg3[%c0_4, %c0_5] : memref<256x128xbf16, #tpu.memory_space<vmem>>, vector<256x128xbf16>
    %cst = arith.constant dense<0.000000e+00> : vector<256x128xf32>
    %6 = tpu.matmul %4, %5, %cst {dimension_numbers = #tpu.dot_dimension_numbers<[1], [0], [0], [1], [0, 0, 1, 1], [], []>} : vector<256x256xbf16>, vector<256x128xbf16>, vector<256x128xf32> -> vector<256x128xf32>
    %7 = arith.addf %3, %6 : vector<256x128xf32>
    %c0_6 = arith.constant 0 : index
    %c0_7 = arith.constant 0 : index
    %8 = vector.load %arg8[%c0_6, %c0_7] : memref<256x128xf32, #tpu.memory_space<vmem>>, vector<256x128xf32>
    tpu.vector_store %arg8[%c0_6, %c0_7], %7 {strides = array<i32>} : memref<256x128xf32, #tpu.memory_space<vmem>>, vector<256x128xf32>,
    %c0_i32_8 = arith.constant 0 : i32
    %9 = arith.cmpi eq, %arg1, %c0_i32_8 : i32
    %10 = arith.extui %9 : i1 to i32
    %c0_i32_9 = arith.constant 0 : i32
    %11 = arith.cmpi ne, %10, %c0_i32_9 : i32
    scf.if %11 {
      %c0_10 = arith.constant 0 : index
      %c0_11 = arith.constant 0 : index
      %12 = vector.load %arg4[%c0_10, %c0_11] : memref<256x1xf32, #tpu.memory_space<vmem>>, vector<256x1xf32>
      %c0_12 = arith.constant 0 : index
      %c0_13 = arith.constant 0 : index
      %13 = vector.load %arg8[%c0_12, %c0_13] : memref<256x128xf32, #tpu.memory_space<vmem>>, vector<256x128xf32>
      %14 = vector.broadcast %12 : vector<256x1xf32> to vector<256x128xf32>
      %15 = arith.mulf %13, %14 : vector<256x128xf32>
      %c0_14 = arith.constant 0 : index
      %c0_15 = arith.constant 0 : index
      %16 = vector.load %arg5[%c0_14, %c0_15] : memref<1x128xf32, #tpu.memory_space<vmem>>, vector<1x128xf32>
      %17 = vector.broadcast %16 : vector<1x128xf32> to vector<256x128xf32>
      %18 = arith.addf %15, %17 : vector<256x128xf32>
      %cst_16 = arith.constant 0.000000e+00 : f32
      %19 = vector.broadcast %cst_16 : f32 to vector<256x128xf32>
      %20 = arith.maximumf %18, %19 : vector<256x128xf32>
      %c0_17 = arith.constant 0 : index
      %c0_18 = arith.constant 0 : index
      %21 = vector.load %arg6[%c0_17, %c0_18] : memref<128x128xf32, #tpu.memory_space<vmem>>, vector<128x128xf32>
      %cst_19 = arith.constant dense<0.000000e+00> : vector<256x128xf32>
      %22 = tpu.matmul %20, %21, %cst_19 {dimension_numbers = #tpu.dot_dimension_numbers<[1], [0], [0], [1], [0, 0, 1, 1], [], []>} : vector<256x128xf32>, vector<128x128xf32>, vector<256x128xf32> -> vector<256x128xf32>
      %23 = vector.broadcast %12 : vector<256x1xf32> to vector<256x128xf32>
      %24 = arith.mulf %22, %23 : vector<256x128xf32>
      %25 = arith.truncf %24 : vector<256x128xf32> to vector<256x128xbf16>
      %c0_20 = arith.constant 0 : index
      %c0_21 = arith.constant 0 : index
      %26 = vector.load %arg7[%c0_20, %c0_21] : memref<256x128xbf16, #tpu.memory_space<vmem>>, vector<256x128xbf16>
      tpu.vector_store %arg7[%c0_20, %c0_21], %25 {strides = array<i32>} : memref<256x128xbf16, #tpu.memory_space<vmem>>, vector<256x128xbf16>,
    } else {
    }
    return
  }
  func.func @transform_0(%arg0: i32, %arg1: i32) -> (i32, i32) {
    %c0_i32 = arith.constant 0 : i32
    return %arg0, %arg1 : i32, i32
  }
  func.func @transform_1(%arg0: i32, %arg1: i32) -> (i32, i32) {
    %c0_i32 = arith.constant 0 : i32
    %c0_i32_0 = arith.constant 0 : i32
    return %arg1, %c0_i32 : i32, i32
  }
  func.func @transform_2(%arg0: i32, %arg1: i32) -> (i32, i32) {
    %c0_i32 = arith.constant 0 : i32
    %c0_i32_0 = arith.constant 0 : i32
    return %arg0, %c0_i32 : i32, i32
  }
  func.func @transform_3(%arg0: i32, %arg1: i32) -> (i32, i32) {
    %c0_i32 = arith.constant 0 : i32
    %c0_i32_0 = arith.constant 0 : i32
    %c0_i32_1 = arith.constant 0 : i32
    return %c0_i32, %c0_i32_0 : i32, i32
  }
  func.func @transform_4(%arg0: i32, %arg1: i32) -> (i32, i32) {
    %c0_i32 = arith.constant 0 : i32
    %c0_i32_0 = arith.constant 0 : i32
    %c0_i32_1 = arith.constant 0 : i32
    return %c0_i32, %c0_i32_0 : i32, i32
  }
  func.func @transform_5(%arg0: i32, %arg1: i32) -> (i32, i32) {
    %c0_i32 = arith.constant 0 : i32
    %c0_i32_0 = arith.constant 0 : i32
    return %arg0, %c0_i32 : i32, i32
  }
}

</mosaic_0001>

<bundles_post_ra>
// kernel: tpu_custom_call.1
= control target key start
LH: loop header
LB: loop body
LE: loop exit
PB: predicated region body
PF: predicated region fallthrough
CT: control target
= control target key end

     0   :  { %10 = vsyncpa [#allocation4], 0  ;;  %s2482_s0 = inlined_call_operand.vmem [shape: bf16[256,256], index: 0, kind: input, shape index: {}]   ;;  %s2483_s1 = inlined_call_operand.hbm [shape: bf16[256,128], index: 1, kind: input, shape index: {}]   ;;  %s2484_s2 = inlined_call_operand.vmem [shape: f32[256,1], index: 2, kind: input, shape index: {}]   ;;  %s2485_s3 = inlined_call_operand.vmem [shape: f32[1,128], index: 3, kind: input, shape index: {}]   ;;  %s2486_s4 = inlined_call_operand.hbm [shape: f32[128,128], index: 4, kind: input, shape index: {}]   ;;  %s2487_s5 = inlined_call_operand.hbm [shape: bf16[256,128], index: 5, kind: output, shape index: {}]  }
   0x1   :  { %11 = vsyncpa [#allocation7], 0 }
   0x2   :  { %12 = vsyncpa [#allocation5], 0  ;;  %s2048_s18 = smov [#allocation3]  }
   0x3   :  { %s20_s19 = sshll.u32 %s2048_s18, 4  ;;  %s21_s19 = int_to_ptr.vmem [resolvable:$true] %s20_s19 }
   0x4   :  { %s1990_s20 = scalar_lea.vmem %s21_s19, 2048  ;;  %p1995_p1 = scmp.lt.s32.totalorder %s21_s19, %s21_s19 }
   0x5   :  { %p1991_p0 = scmp.ne.s32.totalorder %s21_s19, %s1990_s20  ;;  %p1996_p2 = scmp.lt.s32.totalorder %s1990_s20, %s1990_s20 }
   0x7   :  { %p1997_p3 = por %p1996_p2, %p1995_p1 }
   0x9   :  { %p1998_p4 = pnand %p1997_p3, %p1991_p0 }
   0xb   :  { %2001 = shalt.err (!%p1998_p4)
}
   0xc   :  { %s2049_s21 = smov 64   ;;  %s2050_s22 = smov 4  }
   0xd   :  { %26 = dma.hbm_to_vmem [thread:$0]  %s2483_s1, 2048, %s21_s19, [#allocation4], %s2049_s21, %s2049_s21, %s2050_s22  }
   0xe   :  { %s2051_s25 = smov [#allocation6]  }
   0xf   :  { %s36_s26 = sshll.u32 %s2051_s25, 4  ;;  %s37_s26 = int_to_ptr.vmem [resolvable:$true] %s36_s26 }
  0x10   :  { %s2010_s27 = scalar_lea.vmem %s37_s26, 2048  ;;  %p2015_p6 = scmp.lt.s32.totalorder %s37_s26, %s37_s26 }
  0x11   :  { %p2011_p5 = scmp.ne.s32.totalorder %s37_s26, %s2010_s27  ;;  %p2016_p7 = scmp.lt.s32.totalorder %s2010_s27, %s2010_s27 }
  0x13   :  { %p2017_p8 = por %p2016_p7, %p2015_p6 }
  0x15   :  { %p2018_p9 = pnand %p2017_p8, %p2011_p5 }
  0x17   :  { %2021 = shalt.err (!%p2018_p9)
}
  0x18   :  { %s2052_s28 = smov 128   ;;  %s2053_s29 = smov 8  }
  0x19   :  { %42 = dma.hbm_to_vmem [thread:$0]  %s2486_s4, 2048, %s37_s26, [#allocation7], %s2052_s28, %s2052_s28, %s2053_s29  }
  0x1a   :  { %2042 = dma.done.wait [#allocation4], 2048  }
  0x1b   :  { %2043 = vsyncadd [#allocation4], 4294965248 }
  0x1c   :  { %2044 = dma.done.wait [#allocation7], 2048  }
  0x1d   :  { %2045 = vsyncadd [#allocation7], 4294965248  ;;  %v2054_v0 = vmov 0   ;;  %v1918_v1 = vld [vmem:[#allocation3 + $0x78] sm:$0xff]   ;;  %v1920_v3 = vld [vmem:[#allocation3 + $0x70] sm:$0xff]  }
  0x1e   :  { %1916 = vset.pattern.permute.xlu0 %v2054_v0  ;;  %1917 = vset.pattern.permute.xlu1 %v2054_v0  ;;  %v1919_v2 = vld [vmem:[#allocation3 + $0x38] sm:$0xff]   ;;  %v1921_v4 = vld [vmem:[#allocation3 + $0x30] sm:$0xff]   ;;  %v1922_v5 = vld [vmem:[#allocation3 + $0x68] sm:$0xff]  }
  0x1f   :  { %1652 = vmatprep.subr.bf16.mxu0 %v1918_v1  ;;  %1892 = vmatprep.subr.bf16.mxu1 %v1918_v1  ;;  %v1923_v6 = vld [vmem:[#allocation3 + $0x28] sm:$0xff]   ;;  %v1924_v7 = vld [vmem:[#allocation3 + $0x60] sm:$0xff]   ;;  %v1926_v9 = vld [vmem:[#allocation3 + $0x58] sm:$0xff]  }
  0x20   :  { %1653 = vmatpush3.bf16.msra.mxu0 %v1919_v2  ;;  %1900 = vmatpush3.bf16.msra.mxu1 %v1919_v2  ;;  %v1925_v8 = vld [vmem:[#allocation3 + $0x20] sm:$0xff]   ;;  %v1927_v10 = vld [vmem:[#allocation3 + $0x18] sm:$0xff]   ;;  %v1928_v11 = vld [vmem:[#allocation3 + $0x50] sm:$0xff]  }
  0x21   :  { %1654 = vmatprep.subr.bf16.mxu0 %v1920_v3  ;;  %1893 = vmatprep.subr.bf16.mxu1 %v1920_v3  ;;  %v1936_v12 = vld [vmem:[%s2482_s0 + $0x4] ss:$8 sps:$4 sm:$0xff]   ;;  %v1929_v13 = vld [vmem:[#allocation3 + $0x10] sm:$0xff]   ;;  %v1934_v19 = vld [vmem:[%s2482_s0] ss:$8 sps:$4 sm:$0xff]  }
  0x22   :  { %470 = vmatprep.mubr.bf16.mxu0 %v1936_v12  ;;  %v1930_v14 = vld [vmem:[#allocation3 + $0x48] sm:$0xff]   ;;  %v1932_v17 = vld [vmem:[#allocation3 + $0x40] sm:$0xff]   ;;  %v1937_v20 = vld [vmem:[%s2482_s0 + $0x14] ss:$8 sps:$4 sm:$0xff]  }
  0x23   :  { %v1945_v15 = vld [vmem:[%s2482_s0 + $0xc4] ss:$8 sps:$4 sm:$0xff]   ;;  %v1943_v21 = vld [vmem:[%s2482_s0 + $0xc0] ss:$8 sps:$4 sm:$0xff]   ;;  %v1949_v22 = vld [vmem:[%s2482_s0 + $0xd4] ss:$8 sps:$4 sm:$0xff]  }
  0x24   :  { %1655 = vmatpush3.bf16.msra.mxu0 %v1921_v4  ;;  %1901 = vmatpush3.bf16.msra.mxu1 %v1921_v4  ;;  %v1931_v16 = vld [vmem:[#allocation3 + $0x8] sm:$0xff]   ;;  %v1933_v18 = vld [vmem:[#allocation3] sm:$0xff]   ;;  %v668_v24 = vld [vmem:[%s2484_s2 + $0x10] sm:$0xff] }
  0x25   :  { %1656 = vmatprep.subr.bf16.mxu0 %v1922_v5  ;;  %1894 = vmatprep.subr.bf16.mxu1 %v1922_v5  ;;  %v666_v23 = vld [vmem:[%s2484_s2] sm:$0xff]  ;;  %v667_v25 = vld [vmem:[%s2484_s2 + $0x8] sm:$0xff]  ;;  %v669_v26 = vld [vmem:[%s2484_s2 + $0x18] sm:$0xff] }
  0x26   :  { %566 = vmatprep.mubr.bf16.mxu1 %v1945_v15  ;;  %732 = vperm.xlu0 %1916, %v666_v23   ;;  %v1939_v27 = vld [vmem:[%s2482_s0 + $0x10] ss:$8 sps:$4 sm:$0xff]   ;;  %v670_v28 = vld [vmem:[%s2484_s2 + $0x20] sm:$0xff]  ;;  %v671_v29 = vld [vmem:[%s2484_s2 + $0x28] sm:$0xff] }
  0x27   :  { %742 = vperm.xlu1 %1917, %v668_v24   ;;  %v1940_v30 = vld [vmem:[%s2482_s0 + $0x24] ss:$8 sps:$4 sm:$0xff]   ;;  %v1951_v31 = vld [vmem:[%s2482_s0 + $0xd0] ss:$8 sps:$4 sm:$0xff]   ;;  %v1942_v35 = vld [vmem:[%s2482_s0 + $0x20] ss:$8 sps:$4 sm:$0xff]  }
  0x28   :  { %1657 = vmatpush3.bf16.msra.mxu0 %v1923_v6  ;;  %1902 = vmatpush3.bf16.msra.mxu1 %v1923_v6  ;;  %v1955_v32 = vld [vmem:[%s2482_s0 + $0xe4] ss:$8 sps:$4 sm:$0xff]   ;;  %v672_v33 = vld [vmem:[%s2484_s2 + $0x30] sm:$0xff]  ;;  %v673_v34 = vld [vmem:[%s2484_s2 + $0x38] sm:$0xff] }
  0x29   :  { %1658 = vmatprep.subr.bf16.mxu0 %v1924_v7  ;;  %1895 = vmatprep.subr.bf16.mxu1 %v1924_v7  ;;  %v674_v36 = vld [vmem:[%s2484_s2 + $0x40] sm:$0xff]  ;;  %v675_v37 = vld [vmem:[%s2484_s2 + $0x48] sm:$0xff]  ;;  %v1946_v38 = vld [vmem:[%s2482_s0 + $0x34] ss:$8 sps:$4 sm:$0xff]  }
  0x2a   :  { %737 = vperm.xlu0 %1916, %v667_v25   ;;  %v1957_v39 = vld [vmem:[%s2482_s0 + $0xe0] ss:$8 sps:$4 sm:$0xff]   ;;  %v1961_v40 = vld [vmem:[%s2482_s0 + $0xf4] ss:$8 sps:$4 sm:$0xff]   ;;  %v1948_v46 = vld [vmem:[%s2482_s0 + $0x30] ss:$8 sps:$4 sm:$0xff]  }
  0x2b   :  { %747 = vperm.xlu1 %1917, %v669_v26   ;;  %v1008_v41 = vld [vmem:[#allocation6 + $0x78] sm:$0xff]  ;;  %v676_v42 = vld [vmem:[%s2484_s2 + $0x50] sm:$0xff]  ;;  %v1006_v45 = vld [vmem:[#allocation6 + $0x68] sm:$0xff] }
  0x2c   :  { %1659 = vmatpush3.bf16.msra.mxu0 %v1925_v8  ;;  %1903 = vmatpush3.bf16.msra.mxu1 %v1925_v8  ;;  %v677_v43 = vld [vmem:[%s2484_s2 + $0x58] sm:$0xff]  ;;  %v1007_v44 = vld [vmem:[#allocation6 + $0x70] sm:$0xff]  ;;  %v678_v47 = vld [vmem:[%s2484_s2 + $0x60] sm:$0xff] }
  0x2d   :  { %1660 = vmatprep.subr.bf16.mxu0 %v1926_v9  ;;  %1896 = vmatprep.subr.bf16.mxu1 %v1926_v9  ;;  %v679_v48 = vld [vmem:[%s2484_s2 + $0x68] sm:$0xff]  ;;  %v1963_v50 = vld [vmem:[%s2482_s0 + $0xf0] ss:$8 sps:$4 sm:$0xff]   ;;  %v1005_v51 = vld [vmem:[#allocation6 + $0x60] sm:$0xff] }
  0x2e   :  { %752 = vperm.xlu0 %1916, %v670_v28   ;;  %v1952_v49 = vld [vmem:[%s2482_s0 + $0x44] ss:$8 sps:$4 sm:$0xff]   ;;  %v680_v52 = vld [vmem:[%s2484_s2 + $0x70] sm:$0xff]  ;;  %v681_v53 = vld [vmem:[%s2484_s2 + $0x78] sm:$0xff] }
  0x2f   :  { %757 = vperm.xlu1 %1917, %v671_v29   ;;  %v1004_v54 = vld [vmem:[#allocation6 + $0x58] sm:$0xff]  ;;  %v1954_v55 = vld [vmem:[%s2482_s0 + $0x40] ss:$8 sps:$4 sm:$0xff]   ;;  %v1003_v59 = vld [vmem:[#allocation6 + $0x50] sm:$0xff] }
  0x30   :  { %1661 = vmatpush3.bf16.msra.mxu0 %v1927_v10  ;;  %1904 = vmatpush3.bf16.msra.mxu1 %v1927_v10  ;;  %v682_v56 = vld [vmem:[%s2484_s2 + $0x80] sm:$0xff]  ;;  %v683_v57 = vld [vmem:[%s2484_s2 + $0x88] sm:$0xff]  ;;  %v1958_v58 = vld [vmem:[%s2482_s0 + $0x54] ss:$8 sps:$4 sm:$0xff]  }
  0x31   :  { %1662 = vmatprep.subr.bf16.mxu0 %v1928_v11  ;;  %1897 = vmatprep.subr.bf16.mxu1 %v1928_v11  ;;  %v1002_v60 = vld [vmem:[#allocation6 + $0x48] sm:$0xff]  ;;  %v684_v61 = vld [vmem:[%s2484_s2 + $0x90] sm:$0xff]  ;;  %v685_v62 = vld [vmem:[%s2484_s2 + $0x98] sm:$0xff] }
  0x32   :  { %762 = vperm.xlu0 %1916, %v672_v33   ;;  %v1001_v63 = vld [vmem:[#allocation6 + $0x40] sm:$0xff]  ;;  %v1960_v0 = vld [vmem:[%s2482_s0 + $0x50] ss:$8 sps:$4 sm:$0xff]   ;;  %v687_v2 = vld [vmem:[%s2484_s2 + $0xa8] sm:$0xff] }
  0x33   :  { %767 = vperm.xlu1 %1917, %v673_v34   ;;  %v686_v1 = vld [vmem:[%s2484_s2 + $0xa0] sm:$0xff]  ;;  %v1000_v4 = vld [vmem:[#allocation6 + $0x38] sm:$0xff]  ;;  %v688_v5 = vld [vmem:[%s2484_s2 + $0xb0] sm:$0xff] }
  0x34   :  { %1663 = vmatpush3.bf16.msra.mxu0 %v1929_v13  ;;  %1905 = vmatpush3.bf16.msra.mxu1 %v1929_v13  ;;  %v1964_v3 = vld [vmem:[%s2482_s0 + $0x64] ss:$8 sps:$4 sm:$0xff]   ;;  %v689_v6 = vld [vmem:[%s2484_s2 + $0xb8] sm:$0xff]  ;;  %v1966_v7 = vld [vmem:[%s2482_s0 + $0x60] ss:$8 sps:$4 sm:$0xff]  }
  0x35   :  { %1664 = vmatprep.subr.bf16.mxu0 %v1930_v14  ;;  %1898 = vmatprep.subr.bf16.mxu1 %v1930_v14  ;;  %v690_v8 = vld [vmem:[%s2484_s2 + $0xc0] sm:$0xff]  ;;  %v691_v9 = vld [vmem:[%s2484_s2 + $0xc8] sm:$0xff]  ;;  %v1967_v10 = vld [vmem:[%s2482_s0 + $0x74] ss:$8 sps:$4 sm:$0xff]  }
  0x36   :  { %772 = vperm.xlu0 %1916, %v674_v36   ;;  %v692_v11 = vld [vmem:[%s2484_s2 + $0xd0] sm:$0xff]  ;;  %v693_v12 = vld [vmem:[%s2484_s2 + $0xd8] sm:$0xff]  ;;  %v694_v14 = vld [vmem:[%s2484_s2 + $0xe0] sm:$0xff] }
  0x37   :  { %777 = vperm.xlu1 %1917, %v675_v37   ;;  %v1969_v13 = vld [vmem:[%s2482_s0 + $0x70] ss:$8 sps:$4 sm:$0xff]   ;;  %v695_v15 = vld [vmem:[%s2484_s2 + $0xe8] sm:$0xff]  ;;  %v997_v24 = vld [vmem:[#allocation6 + $0x20] sm:$0xff] }
  0x38   :  { %1665 = vmatpush3.bf16.msra.mxu0 %v1931_v16  ;;  %1906 = vmatpush3.bf16.msra.mxu1 %v1931_v16  ;;  %v1970_v16 = vld [vmem:[%s2482_s0 + $0x84] ss:$8 sps:$4 sm:$0xff]   ;;  %v1975_v23 = vld [vmem:[%s2482_s0 + $0x90] ss:$8 sps:$4 sm:$0xff]   ;;  %v1978_v29 = vld [vmem:[%s2482_s0 + $0xa0] ss:$8 sps:$4 sm:$0xff]  }
  0x39   :  { %1666 = vmatprep.subr.bf16.mxu0 %v1932_v17  ;;  %1899 = vmatprep.subr.bf16.mxu1 %v1932_v17  ;;  %v696_v17 = vld [vmem:[%s2484_s2 + $0xf0] sm:$0xff]  ;;  %v1976_v25 = vld [vmem:[%s2482_s0 + $0xa4] ss:$8 sps:$4 sm:$0xff]   ;;  %v996_v26 = vld [vmem:[#allocation6 + $0x18] sm:$0xff] }
  0x3a   :  { %782 = vperm.xlu0 %1916, %v676_v42   ;;  %v994_v28 = vld [vmem:[#allocation6 + $0x8] sm:$0xff] }
  0x3b   :  { %787 = vperm.xlu1 %1917, %v677_v43  }
  0x3c   :  { %1667 = vmatpush3.bf16.msra.mxu0 %v1933_v18  ;;  %1907 = vmatpush3.bf16.msra.mxu1 %v1933_v18  ;;  %v697_v18 = vld [vmem:[%s2484_s2 + $0xf8] sm:$0xff] }
  0x3d   :  { %1812 = vmatprep.subr.mxu1 %v1008_v41 }
  0x3e   :  { %792 = vperm.xlu0 %1916, %v678_v47  }
  0x3f   :  { %471 = vmatmul.mubr.bf16.vlgmr.msra.gmra.mxu0 %v1934_v19  ;;  %567 = vmatmul.mubr.bf16.vlgmr.msra.gmra.mxu1 %v1943_v21  ;;  %v1972_v19 = vld [vmem:[%s2482_s0 + $0x80] ss:$8 sps:$4 sm:$0xff]   ;;  %v999_v21 = vld [vmem:[#allocation6 + $0x30] sm:$0xff] }
  0x40   :  { %478 = vmatprep.mubr.bf16.mxu0 %v1937_v20  ;;  %574 = vmatprep.mubr.bf16.mxu1 %v1949_v22  ;;  %v1973_v20 = vld [vmem:[%s2482_s0 + $0x94] ss:$8 sps:$4 sm:$0xff]   ;;  %v998_v22 = vld [vmem:[#allocation6 + $0x28] sm:$0xff] }
  0x41   :  { %1813 = vmatpush3.msra.mxu1 %v1008_v41  ;;  %797 = vperm.xlu1 %1917, %v679_v48  }
  0x42   :  { %1814 = vmatprep.subr.mxu1 %v1007_v44  ;;  %802 = vperm.xlu0 %1916, %v680_v52  }
  0x43   :  { %1815 = vmatpush3.msra.mxu1 %v1007_v44 }
  0x44   :  { %1816 = vmatprep.subr.mxu1 %v1006_v45 }
  0x45   :  { %1817 = vmatpush3.msra.mxu1 %v1006_v45  ;;  %807 = vperm.xlu1 %1917, %v681_v53  }
  0x46   :  { %1818 = vmatprep.subr.mxu1 %v1005_v51  ;;  %812 = vperm.xlu0 %1916, %v682_v56  }
  0x47   :  { %479 = vmatmul.mubr.bf16.gmra.mxu0 %v1939_v27  ;;  %575 = vmatmul.mubr.bf16.gmra.mxu1 %v1951_v31  ;;  %v995_v27 = vld [vmem:[#allocation6 + $0x10] sm:$0xff] }
  0x48   :  { %486 = vmatprep.mubr.bf16.mxu0 %v1940_v30  ;;  %582 = vmatprep.mubr.bf16.mxu1 %v1955_v32  ;;  %v993_v30 = vld [vmem:[#allocation6] sm:$0xff]  ;;  %v1979_v31 = vld [vmem:[%s2482_s0 + $0xb4] ss:$8 sps:$4 sm:$0xff]   ;;  %v1981_v32 = vld [vmem:[%s2482_s0 + $0xb0] ss:$8 sps:$4 sm:$0xff]   ;;  %s2055_s0 = smov [#allocation8]  }
  0x49   :  { %1819 = vmatpush3.msra.mxu1 %v1005_v51  ;;  %817 = vperm.xlu1 %1917, %v683_v57  }
  0x4a   :  { %1820 = vmatprep.subr.mxu1 %v1004_v54  ;;  %822 = vperm.xlu0 %1916, %v684_v61  }
  0x4b   :  { %1821 = vmatpush3.msra.mxu1 %v1004_v54 }
  0x4c   :  { %1822 = vmatprep.subr.mxu1 %v1003_v59 }
  0x4d   :  { %1823 = vmatpush3.msra.mxu1 %v1003_v59  ;;  %827 = vperm.xlu1 %1917, %v685_v62  }
  0x4e   :  { %1824 = vmatprep.subr.mxu1 %v1002_v60  ;;  %832 = vperm.xlu0 %1916, %v686_v1  }
  0x4f   :  { %487 = vmatmul.mubr.bf16.gmra.mxu0 %v1942_v35  ;;  %583 = vmatmul.mubr.bf16.gmra.mxu1 %v1957_v39 }
  0x50   :  { %494 = vmatprep.mubr.bf16.mxu0 %v1946_v38  ;;  %590 = vmatprep.mubr.bf16.mxu1 %v1961_v40  ;;  %v2292_v38 = vld [vmem:[%s2485_s3] ss:$0 sm:$0xff]  ;;  %s1431_s3 = sshll.u32 %s2055_s0, 4  ;;  %s1432_s3 = int_to_ptr.vmem [resolvable:$true] %s1431_s3 }
  0x51   :  { %1825 = vmatpush3.msra.mxu1 %v1002_v60  ;;  %837 = vperm.xlu1 %1917, %v687_v2   ;;  %s2022_s9 = scalar_lea.vmem %s1432_s3, 2048  ;;  %p2027_p11 = scmp.lt.s32.totalorder %s1432_s3, %s1432_s3 }
  0x52   :  { %1826 = vmatprep.subr.mxu1 %v1001_v63  ;;  %842 = vperm.xlu0 %1916, %v688_v5   ;;  %p2023_p10 = scmp.ne.s32.totalorder %s1432_s3, %s2022_s9  ;;  %p2028_p12 = scmp.lt.s32.totalorder %s2022_s9, %s2022_s9 }
  0x53   :  { %1827 = vmatpush3.msra.mxu1 %v1001_v63 }
  0x54   :  { %1828 = vmatprep.subr.mxu1 %v1000_v4  ;;  %p2029_p13 = por %p2028_p12, %p2027_p11 }
  0x55   :  { %1829 = vmatpush3.msra.mxu1 %v1000_v4  ;;  %847 = vperm.xlu1 %1917, %v689_v6  }
  0x56   :  { %852 = vperm.xlu0 %1916, %v690_v8   ;;  %1830 = vmatprep.subr.mxu1 %v999_v21  ;;  %p2030_p0 = pnand %p2029_p13, %p2023_p10 }
  0x57   :  { %495 = vmatmul.mubr.bf16.gmra.mxu0 %v1948_v46  ;;  %591 = vmatmul.mubr.bf16.gmra.mxu1 %v1963_v50 }
  0x58   :  { %502 = vmatprep.mubr.bf16.mxu0 %v1952_v49  ;;  %1831 = vmatpush3.msra.mxu1 %v999_v21 }
  0x59   :  { %857 = vperm.xlu1 %1917, %v691_v9   ;;  %1832 = vmatprep.subr.mxu1 %v998_v22 }
  0x5a   :  { %862 = vperm.xlu0 %1916, %v692_v11   ;;  %1833 = vmatpush3.msra.mxu1 %v998_v22 }
  0x5b   :  { %1834 = vmatprep.subr.mxu1 %v997_v24 }
  0x5c   :  { %1835 = vmatpush3.msra.mxu1 %v997_v24 }
  0x5d   :  { %867 = vperm.xlu1 %1917, %v693_v12   ;;  %1836 = vmatprep.subr.mxu1 %v996_v26 }
  0x5e   :  { %872 = vperm.xlu0 %1916, %v694_v14   ;;  %1837 = vmatpush3.msra.mxu1 %v996_v26 }
  0x5f   :  { %503 = vmatmul.mubr.bf16.gmra.mxu0 %v1954_v55  ;;  %1838 = vmatprep.subr.mxu1 %v995_v27 }
  0x60   :  { %510 = vmatprep.mubr.bf16.mxu0 %v1958_v58  ;;  %1839 = vmatpush3.msra.mxu1 %v995_v27 }
  0x61   :  { %877 = vperm.xlu1 %1917, %v695_v15   ;;  %1840 = vmatprep.subr.mxu1 %v994_v28 }
  0x62   :  { %882 = vperm.xlu0 %1916, %v696_v17   ;;  %1841 = vmatpush3.msra.mxu1 %v994_v28 }
  0x63   :  { %1842 = vmatprep.subr.mxu1 %v993_v30 }
  0x64   :  { %1843 = vmatpush3.msra.mxu1 %v993_v30 }
  0x65   :  { %887 = vperm.xlu1 %1917, %v697_v18  }
  0x67   :  { %511 = vmatmul.mubr.bf16.gmra.mxu0 %v1960_v0 }
  0x68   :  { %518 = vmatprep.mubr.bf16.mxu0 %v1964_v3 }
  0x6f   :  { %519 = vmatmul.mubr.bf16.gmra.mxu0 %v1966_v7 }
  0x70   :  { %526 = vmatprep.mubr.bf16.mxu0 %v1967_v10 }
  0x77   :  { %527 = vmatmul.mubr.bf16.gmra.mxu0 %v1969_v13 }
  0x78   :  { %534 = vmatprep.mubr.bf16.mxu0 %v1970_v16 }
  0x7f   :  { %535 = vmatmul.mubr.bf16.gmra.mxu0 %v1972_v19 }
  0x80   :  { %542 = vmatprep.mubr.bf16.mxu0 %v1973_v20 }
  0x87   :  { %543 = vmatmul.mubr.bf16.gmra.mxu0 %v1975_v23 }
  0x88   :  { %550 = vmatprep.mubr.bf16.mxu0 %v1976_v25 }
  0x8f   :  { %551 = vmatmul.mubr.bf16.gmra.mxu0 %v1978_v29 }
  0x90   :  { %558 = vmatprep.mubr.bf16.mxu0 %v1979_v31 }
  0x97   :  { %559 = vmatmul.mubr.bf16.gmra.mxu0 %v1981_v32 }
  0xa1   :  { %v2287_v34 = vpop.permute.xlu0 %732 }
  0xa2   :  { %v2299_v47 = vpop.permute.xlu1 %742 }
  0xa5   :  { %v2296_v43 = vpop.permute.xlu0 %737 }
  0xa6   :  { %v2304_v57 = vpop.permute.xlu1 %747 }
  0xa9   :  { %v2308_v0 = vpop.permute.xlu0 %752 }
  0xaa   :  { %v2312_v7 = vpop.permute.xlu1 %757 }
  0xad   :  { %v2316_v14 = vpop.permute.xlu0 %762 }
  0xae   :  { %v2320_v21 = vpop.permute.xlu1 %767 }
  0xb1   :  { %v2324_v28 = vpop.permute.xlu0 %772 }
  0xff   :  { %v1668_v33 = vpop.f32.mrf.mxu0 }
 0x101   :  { %v1669_v35 = vpop.f32.mrf.mxu0 }
 0x102   :  { %v1670_v36 = vadd.f32 %v1669_v35, %v1668_v33  ;;  %v2327_v33 = vpop.permute.xlu1 %777 }
 0x103   :  { %v1671_v37 = vpop.f32.mrf.mxu0 }
 0x104   :  { %v890_v39 = vmul.f32 %v1670_v36, %v2287_v34 }
 0x105   :  { %v1672_v40 = vpop.f32.mrf.mxu0 }
 0x106   :  { %v1673_v41 = vadd.f32 %v1672_v40, %v1671_v37  ;;  %v929_v42 = vadd.f32 %v2292_v38, %v890_v39 }
 0x107   :  { %v1674_v44 = vpop.f32.mrf.mxu0 }
 0x108   :  { %v891_v45 = vmul.f32 %v1673_v41, %v2296_v43  ;;  %v961_v46 = vmax.f32 %v929_v42, 0.0  ;;  %v2331_v41 = vpop.f32.mrf.mxu1 }
 0x109   :  { %v1675_v48 = vpop.f32.mrf.mxu0 }
 0x10a   :  { %v930_v49 = vadd.f32 %v2292_v38, %v891_v45  ;;  %v1676_v50 = vadd.f32 %v1675_v48, %v1674_v44  ;;  %1844 = vmatprep.mubr.f32.mxu1 %v961_v46  ;;  %v2333_v44 = vpop.permute.xlu0 %782 }
 0x10b   :  { %v1677_v51 = vpop.f32.mrf.mxu0 }
 0x10c   :  { %v962_v52 = vmax.f32 %v930_v49, 0.0  ;;  %v892_v53 = vmul.f32 %v1676_v50, %v2299_v47  ;;  %v2336_v49 = vpop.permute.xlu1 %787 }
 0x10d   :  { %v1678_v54 = vpop.f32.mrf.mxu0 }
 0x10e   :  { %v1679_v55 = vadd.f32 %v1678_v54, %v1677_v51  ;;  %1845 = vmatmul.mubr.f32.vlgmr.msra.gmra.mxu1 %v962_v52  ;;  %v931_v56 = vadd.f32 %v2292_v38, %v892_v53  ;;  %v2339_v52 = vpop.f32.mrf.mxu1 }
 0x10f   :  { %v1680_v58 = vpop.f32.mrf.mxu0 }
 0x110   :  { %v893_v59 = vmul.f32 %v1679_v55, %v2304_v57  ;;  %v963_v60 = vmax.f32 %v931_v56, 0.0 }
 0x111   :  { %v1681_v61 = vpop.f32.mrf.mxu0 }
 0x112   :  { %v1682_v62 = vadd.f32 %v1681_v61, %v1680_v58  ;;  %1847 = vmatprep.mubr.f32.mxu1 %v963_v60  ;;  %v932_v63 = vadd.f32 %v2292_v38, %v893_v59  ;;  %v2342_v58 = vpop.permute.xlu0 %792  ;;  %v2345_v61 = vpop.f32.mrf.mxu1 }
 0x113   :  { %v1683_v1 = vpop.f32.mrf.mxu0 }
 0x114   :  { %v894_v2 = vmul.f32 %v1682_v62, %v2308_v0  ;;  %v964_v3 = vmax.f32 %v932_v63, 0.0  ;;  %v2347_v63 = vpop.permute.xlu1 %797 }
 0x115   :  { %v1684_v4 = vpop.f32.mrf.mxu0 }
 0x116   :  { %v1685_v5 = vadd.f32 %v1684_v4, %v1683_v1  ;;  %1848 = vmatmul.mubr.f32.gmra.mxu1 %v964_v3  ;;  %v933_v6 = vadd.f32 %v2292_v38, %v894_v2 }
 0x117   :  { %v1686_v8 = vpop.f32.mrf.mxu0 }
 0x118   :  { %v895_v9 = vmul.f32 %v1685_v5, %v2312_v7  ;;  %v965_v10 = vmax.f32 %v933_v6, 0.0  ;;  %v2351_v6 = vpop.f32.mrf.mxu1 }
 0x119   :  { %v1687_v11 = vpop.f32.mrf.mxu0 }
 0x11a   :  { %v1688_v12 = vadd.f32 %v1687_v11, %v1686_v8  ;;  %1850 = vmatprep.mubr.f32.mxu1 %v965_v10  ;;  %v934_v13 = vadd.f32 %v2292_v38, %v895_v9  ;;  %v2353_v9 = vpop.permute.xlu0 %802 }
 0x11b   :  { %v1689_v15 = vpop.f32.mrf.mxu0 }
 0x11c   :  { %v896_v16 = vmul.f32 %v1688_v12, %v2316_v14  ;;  %v966_v17 = vmax.f32 %v934_v13, 0.0  ;;  %v2356_v13 = vpop.permute.xlu1 %807 }
 0x11d   :  { %v1690_v18 = vpop.f32.mrf.mxu0 }
 0x11e   :  { %v1691_v19 = vadd.f32 %v1690_v18, %v1689_v15  ;;  %1851 = vmatmul.mubr.f32.gmra.mxu1 %v966_v17  ;;  %v935_v20 = vadd.f32 %v2292_v38, %v896_v16  ;;  %v2359_v17 = vpop.f32.mrf.mxu1 }
 0x11f   :  { %v1692_v22 = vpop.f32.mrf.mxu0 }
 0x120   :  { %v897_v23 = vmul.f32 %v1691_v19, %v2320_v21  ;;  %v967_v24 = vmax.f32 %v935_v20, 0.0 }
 0x121   :  { %v1693_v25 = vpop.f32.mrf.mxu0 }
 0x122   :  { %v1694_v26 = vadd.f32 %v1693_v25, %v1692_v22  ;;  %1853 = vmatprep.mubr.f32.mxu1 %v967_v24  ;;  %v936_v27 = vadd.f32 %v2292_v38, %v897_v23  ;;  %v2362_v23 = vpop.permute.xlu0 %812 }
 0x123   :  { %v1695_v29 = vpop.f32.mrf.mxu0 }
 0x124   :  { %v898_v30 = vmul.f32 %v1694_v26, %v2324_v28  ;;  %v968_v31 = vmax.f32 %v936_v27, 0.0  ;;  %v2365_v26 = vpop.f32.mrf.mxu1 }
 0x125   :  { %v1696_v32 = vpop.f32.mrf.mxu0 }
 0x126   :  { %v1697_v35 = vadd.f32 %v1696_v32, %v1695_v29  ;;  %1854 = vmatmul.mubr.f32.gmra.mxu1 %v968_v31  ;;  %v937_v36 = vadd.f32 %v2292_v38, %v898_v30  ;;  %v2367_v29 = vpop.permute.xlu1 %817 }
 0x127   :  { %v1698_v37 = vpop.f32.mrf.mxu0 }
 0x128   :  { %v899_v39 = vmul.f32 %v1697_v35, %v2327_v33  ;;  %v969_v40 = vmax.f32 %v937_v36, 0.0 }
 0x129   :  { %v1699_v42 = vpop.f32.mrf.mxu0 }
 0x12a   :  { %v1700_v45 = vadd.f32 %v1699_v42, %v1698_v37  ;;  %1856 = vmatprep.mubr.f32.mxu1 %v969_v40  ;;  %v938_v46 = vadd.f32 %v2292_v38, %v899_v39  ;;  %v2371_v37 = vpop.f32.mrf.mxu1  ;;  %v2373_v40 = vpop.permute.xlu0 %822 }
 0x12b   :  { %v1701_v48 = vpop.f32.mrf.mxu0 }
 0x12c   :  { %v900_v50 = vmul.f32 %v1700_v45, %v2333_v44  ;;  %v970_v51 = vmax.f32 %v938_v46, 0.0 }
 0x12d   :  { %v1702_v53 = vpop.f32.mrf.mxu0 }
 0x12e   :  { %v1703_v54 = vadd.f32 %v1702_v53, %v1701_v48  ;;  %1857 = vmatmul.mubr.f32.gmra.mxu1 %v970_v51  ;;  %v939_v55 = vadd.f32 %v2292_v38, %v900_v50  ;;  %v2376_v48 = vpop.permute.xlu1 %827  ;;  %v2379_v53 = vpop.f32.mrf.mxu1 }
 0x12f   :  { %v1704_v56 = vpop.f32.mrf.mxu0 }
 0x130   :  { %v901_v59 = vmul.f32 %v1703_v54, %v2336_v49  ;;  %v971_v60 = vmax.f32 %v939_v55, 0.0 }
 0x131   :  { %v1705_v62 = vpop.f32.mrf.mxu0 }
 0x132   :  { %v1706_v1 = vadd.f32 %v1705_v62, %v1704_v56  ;;  %1859 = vmatprep.mubr.f32.mxu1 %v971_v60  ;;  %v940_v2 = vadd.f32 %v2292_v38, %v901_v59  ;;  %v2382_v60 = vpop.permute.xlu0 %832 }
 0x133   :  { %v1707_v3 = vpop.f32.mrf.mxu0 }
 0x134   :  { %v902_v4 = vmul.f32 %v1706_v1, %v2342_v58  ;;  %v972_v5 = vmax.f32 %v940_v2, 0.0  ;;  %v1752_v2 = vpop.f32.mrf.mxu1 }
 0x135   :  { %v1708_v8 = vpop.f32.mrf.mxu0 }
 0x136   :  { %v1709_v10 = vadd.f32 %v1708_v8, %v1707_v3  ;;  %1860 = vmatmul.mubr.f32.gmra.mxu1 %v972_v5  ;;  %v941_v11 = vadd.f32 %v2292_v38, %v902_v4  ;;  %v2385_v4 = vpop.permute.xlu1 %837 }
 0x137   :  { %v1710_v12 = vpop.f32.mrf.mxu0 }
 0x138   :  { %v903_v15 = vmul.f32 %v1709_v10, %v2347_v63  ;;  %v973_v16 = vmax.f32 %v941_v11, 0.0 }
 0x139   :  { %v1711_v18 = vpop.f32.mrf.mxu0 }
 0x13a   :  { %v1712_v19 = vadd.f32 %v1711_v18, %v1710_v12  ;;  %1862 = vmatprep.mubr.f32.mxu1 %v973_v16  ;;  %v942_v20 = vadd.f32 %v2292_v38, %v903_v15  ;;  %v1753_v15 = vpop.f32.mrf.mxu1  ;;  %v2389_v18 = vpop.permute.xlu0 %842 }
 0x13b   :  { %v1713_v22 = vpop.f32.mrf.mxu0 }
 0x13c   :  { %v904_v24 = vmul.f32 %v1712_v19, %v2353_v9  ;;  %v974_v25 = vmax.f32 %v942_v20, 0.0 }
 0x13d   :  { %v1714_v27 = vpop.f32.mrf.mxu0 }
 0x13e   :  { %v1715_v30 = vadd.f32 %v1714_v27, %v1713_v22  ;;  %1863 = vmatmul.mubr.f32.gmra.mxu1 %v974_v25  ;;  %v943_v31 = vadd.f32 %v2292_v38, %v904_v24  ;;  %v2392_v24 = vpop.permute.xlu1 %847 }
 0x13f   :  { %v1716_v32 = vpop.f32.mrf.mxu0 }
 0x140   :  { %v905_v35 = vmul.f32 %v1715_v30, %v2356_v13  ;;  %v975_v36 = vmax.f32 %v943_v31, 0.0  ;;  %v1755_v30 = vpop.f32.mrf.mxu1 }
 0x141   :  { %v1717_v39 = vpop.f32.mrf.mxu0 }
 0x142   :  { %v1718_v42 = vadd.f32 %v1717_v39, %v1716_v32  ;;  %1865 = vmatprep.mubr.f32.mxu1 %v975_v36  ;;  %v944_v45 = vadd.f32 %v2292_v38, %v905_v35  ;;  %v2396_v39 = vpop.permute.xlu0 %852 }
 0x143   :  { %v1719_v46 = vpop.f32.mrf.mxu0 }
 0x144   :  { %v906_v50 = vmul.f32 %v1718_v42, %v2362_v23  ;;  %v976_v51 = vmax.f32 %v944_v45, 0.0 }
 0x145   :  { %v1720_v54 = vpop.f32.mrf.mxu0 }
 0x146   :  { %v1721_v55 = vadd.f32 %v1720_v54, %v1719_v46  ;;  %1866 = vmatmul.mubr.f32.gmra.mxu1 %v976_v51  ;;  %v945_v56 = vadd.f32 %v2292_v38, %v906_v50  ;;  %v1756_v46 = vpop.f32.mrf.mxu1  ;;  %v2399_v51 = vpop.permute.xlu1 %857 }
 0x147   :  { %v1722_v59 = vpop.f32.mrf.mxu0 }
 0x148   :  { %v907_v62 = vmul.f32 %v1721_v55, %v2367_v29  ;;  %v977_v1 = vmax.f32 %v945_v56, 0.0 }
 0x149   :  { %v1723_v3 = vpop.f32.mrf.mxu0 }
 0x14a   :  { %v1724_v5 = vadd.f32 %v1723_v3, %v1722_v59  ;;  %1868 = vmatprep.mubr.f32.mxu1 %v977_v1  ;;  %v946_v8 = vadd.f32 %v2292_v38, %v907_v62  ;;  %v1742_v1 = vadd.f32 %v2339_v52, %v2331_v41  ;;  %v1758_v3 = vpop.f32.mrf.mxu1  ;;  %v1748_v41 = vadd.f32 %v2365_v26, %v2359_v17 }
 0x14b   :  { %v1725_v10 = vpop.f32.mrf.mxu0  ;;  %v1754_v26 = vadd.f32 %v1753_v15, %v1752_v2 }
 0x14c   :  { %v908_v11 = vmul.f32 %v1724_v5, %v2373_v40  ;;  %v978_v12 = vmax.f32 %v946_v8, 0.0  ;;  %v2405_v8 = vpop.permute.xlu0 %862  ;;  %v914_v52 = vmul.f32 %v1742_v1, %v2396_v39 }
 0x14d   :  { %v1726_v16 = vpop.f32.mrf.mxu0 }
 0x14e   :  { %v1727_v19 = vadd.f32 %v1726_v16, %v1725_v10  ;;  %1869 = vmatmul.mubr.f32.gmra.mxu1 %v978_v12  ;;  %v947_v20 = vadd.f32 %v2292_v38, %v908_v11  ;;  %v1745_v16 = vadd.f32 %v2351_v6, %v2345_v61  ;;  %v953_v17 = vadd.f32 %v2292_v38, %v914_v52 }
 0x14f   :  { %v1728_v22 = vpop.f32.mrf.mxu0 }
 0x150   :  { %v909_v25 = vmul.f32 %v1727_v19, %v2376_v48  ;;  %v979_v27 = vmax.f32 %v947_v20, 0.0  ;;  %v2410_v19 = vpop.permute.xlu1 %867  ;;  %v915_v61 = vmul.f32 %v1745_v16, %v2399_v51  ;;  %v2420_v6 = vpop.permute.xlu0 %872  ;;  %v985_v15 = vmax.f32 %v953_v17, 0.0 }
 0x151   :  { %v1729_v31 = vpop.f32.mrf.mxu0  ;;  %v918_v1 = vmul.f32 %v1754_v26, %v2420_v6 }
 0x152   :  { %v1730_v32 = vadd.f32 %v1729_v31, %v1728_v22  ;;  %1871 = vmatprep.mubr.f32.mxu1 %v979_v27  ;;  %v948_v35 = vadd.f32 %v2292_v38, %v909_v25  ;;  %v1759_v25 = vpop.f32.mrf.mxu1 }
 0x153   :  { %v1731_v36 = vpop.f32.mrf.mxu0 }
 0x154   :  { %v910_v42 = vmul.f32 %v1730_v32, %v2382_v60  ;;  %v980_v45 = vmax.f32 %v948_v35, 0.0  ;;  %v1751_v35 = vadd.f32 %v2379_v53, %v2371_v37  ;;  %v954_v37 = vadd.f32 %v2292_v38, %v915_v61 }
 0x155   :  { %v1732_v50 = vpop.f32.mrf.mxu0  ;;  %v1757_v53 = vadd.f32 %v1756_v46, %v1755_v30  ;;  %v957_v46 = vadd.f32 %v2292_v38, %v918_v1 }
 0x156   :  { %v1733_v54 = vadd.f32 %v1732_v50, %v1731_v36  ;;  %1872 = vmatmul.mubr.f32.gmra.mxu1 %v980_v45  ;;  %v949_v55 = vadd.f32 %v2292_v38, %v910_v42  ;;  %v916_v45 = vmul.f32 %v1748_v41, %v2405_v8  ;;  %v1761_v50 = vpop.f32.mrf.mxu1  ;;  %v986_v30 = vmax.f32 %v954_v37, 0.0 }
 0x157   :  { %v1734_v56 = vpop.f32.mrf.mxu0 }
 0x158   :  { %v911_v59 = vmul.f32 %v1733_v54, %v2385_v4  ;;  %v981_v62 = vmax.f32 %v949_v55, 0.0  ;;  %v2426_v55 = vpop.permute.xlu1 %877  ;;  %v1762_v2 = vpop.f32.mrf.mxu1 }
 0x159   :  { %v1735_v5 = vpop.f32.mrf.mxu0  ;;  %v1763_v16 = vadd.f32 %v1762_v2, %v1761_v50 }
 0x15a   :  { %v1736_v10 = vadd.f32 %v1735_v5, %v1734_v56  ;;  %1874 = vmatprep.mubr.f32.mxu1 %v981_v62  ;;  %v950_v11 = vadd.f32 %v2292_v38, %v911_v59  ;;  %v917_v56 = vmul.f32 %v1751_v35, %v2410_v19  ;;  %v955_v62 = vadd.f32 %v2292_v38, %v916_v45 }
 0x15b   :  { %v1737_v12 = vpop.f32.mrf.mxu0  ;;  %v1760_v5 = vadd.f32 %v1759_v25, %v1758_v3 }
 0x15c   :  { %v912_v20 = vmul.f32 %v1736_v10, %v2389_v18  ;;  %v982_v22 = vmax.f32 %v950_v11, 0.0  ;;  %v2432_v10 = vpop.permute.xlu0 %882  ;;  %v956_v11 = vadd.f32 %v2292_v38, %v917_v56  ;;  %v987_v41 = vmax.f32 %v955_v62, 0.0 }
 0x15d   :  { %v1738_v27 = vpop.f32.mrf.mxu0 }
 0x15e   :  { %v1739_v31 = vadd.f32 %v1738_v27, %v1737_v12  ;;  %1875 = vmatmul.mubr.f32.gmra.mxu1 %v982_v22  ;;  %v951_v32 = vadd.f32 %v2292_v38, %v912_v20  ;;  %v919_v12 = vmul.f32 %v1757_v53, %v2426_v55  ;;  %v920_v20 = vmul.f32 %v1760_v5, %v2432_v10  ;;  %v2438_v22 = vpop.permute.xlu1 %887 }
 0x15f   :  { %v921_v52 = vmul.f32 %v1763_v16, %v2438_v22  ;;  %v988_v25 = vmax.f32 %v956_v11, 0.0 }
 0x160   :  { %v913_v36 = vmul.f32 %v1739_v31, %v2392_v24  ;;  %v983_v42 = vmax.f32 %v951_v32, 0.0  ;;  %v958_v3 = vadd.f32 %v2292_v38, %v919_v12  ;;  %v959_v27 = vadd.f32 %v2292_v38, %v920_v20 }
 0x161   :  { %v989_v31 = vmax.f32 %v957_v46, 0.0  ;;  %v960_v32 = vadd.f32 %v2292_v38, %v921_v52 }
 0x162   :  { %1877 = vmatprep.mubr.f32.mxu1 %v983_v42  ;;  %v952_v54 = vadd.f32 %v2292_v38, %v913_v36  ;;  %v990_v35 = vmax.f32 %v958_v3, 0.0  ;;  %v991_v61 = vmax.f32 %v959_v27, 0.0 }
 0x163   :  { %v992_v36 = vmax.f32 %v960_v32, 0.0 }
 0x164   :  { %v984_v59 = vmax.f32 %v952_v54, 0.0 }
 0x166   :  { %1878 = vmatmul.mubr.f32.gmra.mxu1 %v984_v59 }
 0x167   :  { %1880 = vmatprep.mubr.f32.mxu1 %v985_v15 }
 0x16a   :  { %1881 = vmatmul.mubr.f32.gmra.mxu1 %v986_v30 }
 0x16b   :  { %1883 = vmatprep.mubr.f32.mxu1 %v987_v41 }
 0x16e   :  { %1884 = vmatmul.mubr.f32.gmra.mxu1 %v988_v25 }
 0x16f   :  { %1886 = vmatprep.mubr.f32.mxu1 %v989_v31 }
 0x172   :  { %1887 = vmatmul.mubr.f32.gmra.mxu1 %v990_v35 }
 0x173   :  { %1889 = vmatprep.mubr.f32.mxu1 %v991_v61 }
 0x176   :  { %1890 = vmatmul.mubr.f32.gmra.mxu1 %v992_v36 }
 0x1ce   :  { %v1846_v42 = vpop.f32.mrf.mxu1 }
 0x1cf   :  { %v1235_v26 = vmul.f32 %v1846_v42, %v2296_v43 }
 0x1d0   :  { %v1075_v17 = vpop.f32.mrf.mxu1 }
 0x1d1   :  { %v1234_v45 = vmul.f32 %v1075_v17, %v2287_v34 }
 0x1d3   :  { %v1560_v50 = vpack.c.bf16 %v1235_v26, %v1234_v45 }
 0x1d5   :  { %1561 = vst [vmem:[#allocation8] sm:$0xff] %v1560_v50  }
 0x1d6   :  { %v1849_v54 = vpop.f32.mrf.mxu1 }
 0x1d7   :  { %v1237_v53 = vmul.f32 %v1849_v54, %v2304_v57 }
 0x1d8   :  { %v1085_v37 = vpop.f32.mrf.mxu1 }
 0x1d9   :  { %v1236_v38 = vmul.f32 %v1085_v37, %v2299_v47 }
 0x1db   :  { %v1565_v56 = vpack.c.bf16 %v1237_v53, %v1236_v38 }
 0x1dd   :  { %1637 = vst [vmem:[#allocation8 + $0x8] sm:$0xff] %v1565_v56  }
 0x1de   :  { %v1852_v59 = vpop.f32.mrf.mxu1 }
 0x1df   :  { %v1239_v1 = vmul.f32 %v1852_v59, %v2312_v7 }
 0x1e0   :  { %v1095_v62 = vpop.f32.mrf.mxu1 }
 0x1e1   :  { %v1238_v5 = vmul.f32 %v1095_v62, %v2308_v0 }
 0x1e3   :  { %v1570_v2 = vpack.c.bf16 %v1239_v1, %v1238_v5 }
 0x1e5   :  { %1638 = vst [vmem:[#allocation8 + $0x10] sm:$0xff] %v1570_v2  }
 0x1e6   :  { %v1855_v43 = vpop.f32.mrf.mxu1 }
 0x1e7   :  { %v1241_v15 = vmul.f32 %v1855_v43, %v2320_v21 }
 0x1e8   :  { %v1105_v34 = vpop.f32.mrf.mxu1 }
 0x1e9   :  { %v1240_v11 = vmul.f32 %v1105_v34, %v2316_v14 }
 0x1eb   :  { %v1575_v12 = vpack.c.bf16 %v1241_v15, %v1240_v11 }
 0x1ed   :  { %1639 = vst [vmem:[#allocation8 + $0x18] sm:$0xff] %v1575_v12  }
 0x1ee   :  { %v1858_v57 = vpop.f32.mrf.mxu1 }
 0x1ef   :  { %v1243_v16 = vmul.f32 %v1858_v57, %v2327_v33 }
 0x1f0   :  { %v1115_v47 = vpop.f32.mrf.mxu1 }
 0x1f1   :  { %v1242_v30 = vmul.f32 %v1115_v47, %v2324_v28 }
 0x1f3   :  { %v1580_v46 = vpack.c.bf16 %v1243_v16, %v1242_v30 }
 0x1f5   :  { %1640 = vst [vmem:[#allocation8 + $0x20] sm:$0xff] %v1580_v46  }
 0x1f6   :  { %v1861_v7 = vpop.f32.mrf.mxu1 }
 0x1f7   :  { %v1245_v20 = vmul.f32 %v1861_v7, %v2336_v49 }
 0x1f8   :  { %v1125_v0 = vpop.f32.mrf.mxu1 }
 0x1f9   :  { %v1244_v41 = vmul.f32 %v1125_v0, %v2333_v44 }
 0x1fb   :  { %v1585_v3 = vpack.c.bf16 %v1245_v20, %v1244_v41 }
 0x1fd   :  { %1641 = vst [vmem:[#allocation8 + $0x28] sm:$0xff] %v1585_v3  }
 0x1fe   :  { %v1864_v21 = vpop.f32.mrf.mxu1 }
 0x1ff   :  { %v1247_v52 = vmul.f32 %v1864_v21, %v2347_v63 }
 0x200   :  { %v1135_v14 = vpop.f32.mrf.mxu1 }
 0x201   :  { %v1246_v25 = vmul.f32 %v1135_v14, %v2342_v58 }
 0x203   :  { %v1590_v27 = vpack.c.bf16 %v1247_v52, %v1246_v25 }
 0x205   :  { %1642 = vst [vmem:[#allocation8 + $0x30] sm:$0xff] %v1590_v27  }
 0x206   :  { %v1867_v33 = vpop.f32.mrf.mxu1 }
 0x207   :  { %v1249_v31 = vmul.f32 %v1867_v33, %v2356_v13 }
 0x208   :  { %v1145_v28 = vpop.f32.mrf.mxu1 }
 0x209   :  { %v1248_v32 = vmul.f32 %v1145_v28, %v2353_v9 }
 0x20b   :  { %v1595_v35 = vpack.c.bf16 %v1249_v31, %v1248_v32 }
 0x20d   :  { %1643 = vst [vmem:[#allocation8 + $0x38] sm:$0xff] %v1595_v35  }
 0x20e   :  { %v1870_v49 = vpop.f32.mrf.mxu1 }
 0x20f   :  { %v1251_v61 = vmul.f32 %v1870_v49, %v2367_v29 }
 0x210   :  { %v1155_v44 = vpop.f32.mrf.mxu1 }
 0x211   :  { %v1250_v36 = vmul.f32 %v1155_v44, %v2362_v23 }
 0x213   :  { %v1600_v42 = vpack.c.bf16 %v1251_v61, %v1250_v36 }
 0x215   :  { %1644 = vst [vmem:[#allocation8 + $0x40] sm:$0xff] %v1600_v42  }
 0x216   :  { %v1873_v63 = vpop.f32.mrf.mxu1 }
 0x217   :  { %v1253_v17 = vmul.f32 %v1873_v63, %v2376_v48 }
 0x218   :  { %v1165_v58 = vpop.f32.mrf.mxu1 }
 0x219   :  { %v1252_v26 = vmul.f32 %v1165_v58, %v2373_v40 }
 0x21b   :  { %v1605_v45 = vpack.c.bf16 %v1253_v17, %v1252_v26 }
 0x21d   :  { %1645 = vst [vmem:[#allocation8 + $0x48] sm:$0xff] %v1605_v45  }
 0x21e   :  { %v1876_v13 = vpop.f32.mrf.mxu1 }
 0x21f   :  { %v1255_v50 = vmul.f32 %v1876_v13, %v2385_v4 }
 0x220   :  { %v1175_v9 = vpop.f32.mrf.mxu1 }
 0x221   :  { %v1254_v54 = vmul.f32 %v1175_v9, %v2382_v60 }
 0x223   :  { %v1610_v37 = vpack.c.bf16 %v1255_v50, %v1254_v54 }
 0x225   :  { %1646 = vst [vmem:[#allocation8 + $0x50] sm:$0xff] %v1610_v37  }
 0x226   :  { %v1879_v29 = vpop.f32.mrf.mxu1 }
 0x227   :  { %v1257_v53 = vmul.f32 %v1879_v29, %v2392_v24 }
 0x228   :  { %v1185_v23 = vpop.f32.mrf.mxu1 }
 0x229   :  { %v1256_v38 = vmul.f32 %v1185_v23, %v2389_v18 }
 0x22a   :  { %v1882_v56 = vpop.f32.mrf.mxu1 }
 0x22b   :  { %v1615_v48 = vpack.c.bf16 %v1257_v53, %v1256_v38  ;;  %v1259_v40 = vmul.f32 %v1882_v56, %v2399_v51 }
 0x22c   :  { %v1195_v59 = vpop.f32.mrf.mxu1 }
 0x22d   :  { %1647 = vst [vmem:[#allocation8 + $0x58] sm:$0xff] %v1615_v48   ;;  %v1258_v62 = vmul.f32 %v1195_v59, %v2396_v39 }
 0x22e   :  { %v1885_v1 = vpop.f32.mrf.mxu1 }
 0x22f   :  { %v1620_v4 = vpack.c.bf16 %v1259_v40, %v1258_v62  ;;  %v1261_v60 = vmul.f32 %v1885_v1, %v2410_v19 }
 0x230   :  { %v1205_v5 = vpop.f32.mrf.mxu1 }
 0x231   :  { %1648 = vst [vmem:[#allocation8 + $0x60] sm:$0xff] %v1620_v4   ;;  %v1260_v2 = vmul.f32 %v1205_v5, %v2405_v8 }
 0x232   :  { %v1888_v43 = vpop.f32.mrf.mxu1 }
 0x233   :  { %v1625_v24 = vpack.c.bf16 %v1261_v60, %v1260_v2  ;;  %v1263_v18 = vmul.f32 %v1888_v43, %v2426_v55 }
 0x234   :  { %v1215_v34 = vpop.f32.mrf.mxu1 }
 0x235   :  { %1649 = vst [vmem:[#allocation8 + $0x68] sm:$0xff] %v1625_v24   ;;  %v1262_v15 = vmul.f32 %v1215_v34, %v2420_v6 }
 0x236   :  { %v1891_v11 = vpop.f32.mrf.mxu1 }
 0x237   :  { %v1630_v51 = vpack.c.bf16 %v1263_v18, %v1262_v15  ;;  %v1265_v39 = vmul.f32 %v1891_v11, %v2438_v22 }
 0x238   :  { %v1225_v12 = vpop.f32.mrf.mxu1 }
 0x239   :  { %1650 = vst [vmem:[#allocation8 + $0x70] sm:$0xff] %v1630_v51   ;;  %v1264_v19 = vmul.f32 %v1225_v12, %v2432_v10 }
 0x23b   :  { %v1635_v57 = vpack.c.bf16 %v1265_v39, %v1264_v19 }
 0x23d   :  { %1651 = vst [vmem:[#allocation8 + $0x78] sm:$0xff] %v1635_v57  }
 0x23e   :  { %2033 = shalt.err (!%p2030_p0)
}
 0x23f   :  { %1437 = dma.vmem_to_hbm [thread:$0]  %s1432_s3, 2048, %s2487_s5, [#allocation5], %s2049_s21, %s2049_s21, %s2050_s22  }
 0x240   :  { %2046 = dma.done.wait [#allocation5], 2048  }
 0x241   :  { %2047 = vsyncadd [#allocation5], 4294965248 }
 0x242   :  { %1441 = vsyncpa [#allocation4], 1 }
 0x243   :  { %1442 = vsyncpa [#allocation7], 1 }
 0x244   :  { %1443 = vsyncpa [#allocation5], 1 }

</bundles_post_ra>
